<compile_context>
chip_gen: v7x
topology: tpu7x:2x2x1
jax: 0.10.0
libtpu: 0.0.40
codegen_flags: <defaults>
</compile_context>

<pallas_src>
import math

import jax
import jax.numpy as jnp
from jax.experimental import pallas as pl
from jax.experimental.pallas import tpu as pltpu


def _sigmoid_mask_kernel(mask_ref, temp_ref, base_ref, src_ref, out_ref):
    # mask_ref: (1, H) f32, temp_ref: (1, 1) f32, base/src/out: (TR, H)
    scaled = mask_ref[...] / temp_ref[...]                 # (1, H)
    gate = 1.0 / (1.0 + jnp.exp(-scaled))                  # sigmoid, EUP (free slot)
    base = base_ref[...].astype(jnp.float32)
    src = src_ref[...].astype(jnp.float32)
    out_ref[...] = ((1.0 - gate) * base + gate * src).astype(out_ref.dtype)


def _choose_row_tile(rows, h, itemsize):
    """Pick a row tile: big enough to amortize per-step overhead, small enough
    that 3 arrays x 2 pipeline buffers stay well under v7x's 64 MiB VMEM."""
    budget = 24 << 20                        # bytes for 6 * TR * H * itemsize
    tr = budget // max(1, 6 * h * itemsize)
    tr = min(tr, rows, 2048)
    if tr >= rows:
        return rows                          # whole array fits in one block
    sub = 16 if itemsize < 4 else 8          # keep sublane-aligned blocks
    return int(max(sub, (tr // sub) * sub))


def sigmoid_mask_intervention(base, source, mask, temperature):
    """base, source: (..., H); mask: (H,); temperature: scalar."""
    orig_shape = base.shape
    H = orig_shape[-1]
    rows = math.prod(orig_shape[:-1])

    base2d = base.reshape(rows, H)
    src2d = source.reshape(rows, H)
    mask2d = mask.astype(jnp.float32).reshape(1, H)
    temp2d = jnp.asarray(temperature, dtype=jnp.float32).reshape(1, 1)

    itemsize = jnp.dtype(base.dtype).itemsize
    tr = _choose_row_tile(rows, H, itemsize)
    grid = (pl.cdiv(rows, tr),)              # ragged last block is masked by Pallas

    # 3 row-tiles (base, src, out) x 2 pipeline buffers, plus slack for mask/temp.
    tile_bytes = 3 * 2 * tr * H * itemsize
    vmem_limit = int(min(max(2 * tile_bytes, 32 << 20), 48 << 20))

    out2d = pl.pallas_call(
        _sigmoid_mask_kernel,
        out_shape=jax.ShapeDtypeStruct((rows, H), base.dtype),
        grid_spec=pl.GridSpec(
            grid=grid,
            in_specs=[
                pl.BlockSpec((1, H), lambda i: (0, 0)),    # mask (tiny, reloaded per step)
                pl.BlockSpec((1, 1), lambda i: (0, 0)),    # temperature
                pl.BlockSpec((tr, H), lambda i: (i, 0)),   # base row tile
                pl.BlockSpec((tr, H), lambda i: (i, 0)),   # source row tile
            ],
            out_specs=pl.BlockSpec((tr, H), lambda i: (i, 0)),
        ),
        compiler_params=pltpu.CompilerParams(
            dimension_semantics=("parallel",),             # rows independent; shards across TCs on v7x
            vmem_limit_bytes=vmem_limit,
        ),
    )(mask2d, temp2d, base2d, src2d)

    return out2d.reshape(orig_shape)


class SigmoidMaskInterventionPallas:
    """Mirror of pyvene SigmoidMaskIntervention (learned mask + temperature)."""

    def __init__(self, embed_dim=None, **kwargs):
        self.embed_dim = embed_dim
        self.interchange_dim = embed_dim
        self.source_representation = None
        # trainable parameters (as in the PyTorch module: zeros mask, temp=0.01)
        self.mask = jnp.zeros((embed_dim,), dtype=jnp.float32)
        self.temperature = jnp.asarray(0.01, dtype=jnp.float32)

    def get_temperature(self):
        return self.temperature

    def set_temperature(self, temp):
        self.temperature = jnp.asarray(temp, dtype=jnp.float32)

    def set_interchange_dim(self, d):
        # Kept for API parity; forward() ignores it, exactly like the PyTorch module.
        self.interchange_dim = d

    def __call__(self, base, source, subspaces=None, **kwargs):
        # PyTorch forward ignores `subspaces`; we do the same.
        src = source if self.source_representation is None else self.source_representation
        return sigmoid_mask_intervention(base, src, self.mask, self.temperature)


if __name__ == "__main__":
    B, S, H = 2, 8, 32
    key = jax.random.PRNGKey(0)
    k1, k2, k3 = jax.random.split(key, 3)
    base = jax.random.normal(k1, (B, S, H), dtype=jnp.float32)
    source = jax.random.normal(k2, (B, S, H), dtype=jnp.float32)

    intervention = SigmoidMaskInterventionPallas(embed_dim=H)
    # Non-zero mask so the per-dim blend is nontrivial (zeros -> gate = 0.5 everywhere).
    intervention.mask = 0.05 * jax.random.normal(k3, (H,), dtype=jnp.float32)
    intervention.set_temperature(0.01)

    out = intervention(base, source)
    out = jax.block_until_ready(out)

    # Reference in plain JAX
    gate = jax.nn.sigmoid(intervention.mask / intervention.temperature)
    ref = (1.0 - gate) * base + gate * source
    assert jnp.allclose(out, ref, atol=1e-5, rtol=1e-5), "mismatch vs reference"

    print("KERNEL_OK")
</pallas_src>

<mosaic_0001>
module attributes {stable_mosaic.version = 11 : i64} {
  func.func @_sigmoid_mask_kernel(%arg0: i32, %arg1: memref<1x32xf32, #tpu.memory_space<vmem>>, %arg2: memref<1x1xf32, #tpu.memory_space<vmem>>, %arg3: memref<16x32xf32, #tpu.memory_space<vmem>>, %arg4: memref<16x32xf32, #tpu.memory_space<vmem>>, %arg5: memref<16x32xf32, #tpu.memory_space<vmem>>) attributes {dimension_semantics = [#tpu.dimension_semantics<parallel>], iteration_bounds = array<i64: 1>, scalar_prefetch = 0 : i64, scratch_operands = 0 : i64, tpu.core_type = #tpu.core_type<tc>, window_params = [{pipeline_mode = #tpu.pipeline_mode<synchronous>, transform_indices = @transform_0, window_bounds = array<i64: 1, 32>}, {pipeline_mode = #tpu.pipeline_mode<synchronous>, transform_indices = @transform_1, window_bounds = array<i64: 1, 1>}, {transform_indices = @transform_2, window_bounds = array<i64: 16, 32>}, {transform_indices = @transform_3, window_bounds = array<i64: 16, 32>}, {transform_indices = @transform_4, window_bounds = array<i64: 16, 32>}]} {
    %c0 = arith.constant 0 : index
    %c0_0 = arith.constant 0 : index
    %0 = vector.load %arg1[%c0, %c0_0] : memref<1x32xf32, #tpu.memory_space<vmem>>, vector<1x32xf32>
    %c0_1 = arith.constant 0 : index
    %c0_2 = arith.constant 0 : index
    %1 = vector.load %arg2[%c0_1, %c0_2] : memref<1x1xf32, #tpu.memory_space<vmem>>, vector<1x1xf32>
    %2 = vector.broadcast %1 : vector<1x1xf32> to vector<1x32xf32>
    %3 = arith.divf %0, %2 : vector<1x32xf32>
    %cst = arith.constant 0.000000e+00 : f32
    %4 = vector.broadcast %cst : f32 to vector<1x32xf32>
    %5 = arith.subf %4, %3 : vector<1x32xf32>
    %6 = math.exp %5 : vector<1x32xf32>
    %cst_3 = arith.constant 1.000000e+00 : f32
    %7 = vector.broadcast %cst_3 : f32 to vector<1x32xf32>
    %8 = arith.addf %7, %6 : vector<1x32xf32>
    %cst_4 = arith.constant 1.000000e+00 : f32
    %9 = vector.broadcast %cst_4 : f32 to vector<1x32xf32>
    %10 = arith.divf %9, %8 : vector<1x32xf32>
    %c0_5 = arith.constant 0 : index
    %c0_6 = arith.constant 0 : index
    %11 = vector.load %arg3[%c0_5, %c0_6] : memref<16x32xf32, #tpu.memory_space<vmem>>, vector<16x32xf32>
    %c0_7 = arith.constant 0 : index
    %c0_8 = arith.constant 0 : index
    %12 = vector.load %arg4[%c0_7, %c0_8] : memref<16x32xf32, #tpu.memory_space<vmem>>, vector<16x32xf32>
    %cst_9 = arith.constant 1.000000e+00 : f32
    %13 = vector.broadcast %cst_9 : f32 to vector<1x32xf32>
    %14 = arith.subf %13, %10 : vector<1x32xf32>
    %15 = vector.broadcast %14 : vector<1x32xf32> to vector<16x32xf32>
    %16 = arith.mulf %15, %11 : vector<16x32xf32>
    %17 = vector.broadcast %10 : vector<1x32xf32> to vector<16x32xf32>
    %18 = arith.mulf %17, %12 : vector<16x32xf32>
    %19 = arith.addf %16, %18 : vector<16x32xf32>
    %c0_10 = arith.constant 0 : index
    %c0_11 = arith.constant 0 : index
    %20 = vector.load %arg5[%c0_10, %c0_11] : memref<16x32xf32, #tpu.memory_space<vmem>>, vector<16x32xf32>
    tpu.vector_store %arg5[%c0_10, %c0_11], %19 {strides = array<i32>} : memref<16x32xf32, #tpu.memory_space<vmem>>, vector<16x32xf32>,
    return
  }
  func.func @transform_0(%arg0: i32) -> (i32, i32) {
    %c0_i32 = arith.constant 0 : i32
    %c0_i32_0 = arith.constant 0 : i32
    %c0_i32_1 = arith.constant 0 : i32
    return %c0_i32, %c0_i32_0 : i32, i32
  }
  func.func @transform_1(%arg0: i32) -> (i32, i32) {
    %c0_i32 = arith.constant 0 : i32
    %c0_i32_0 = arith.constant 0 : i32
    %c0_i32_1 = arith.constant 0 : i32
    return %c0_i32, %c0_i32_0 : i32, i32
  }
  func.func @transform_2(%arg0: i32) -> (i32, i32) {
    %c0_i32 = arith.constant 0 : i32
    %c0_i32_0 = arith.constant 0 : i32
    return %arg0, %c0_i32 : i32, i32
  }
  func.func @transform_3(%arg0: i32) -> (i32, i32) {
    %c0_i32 = arith.constant 0 : i32
    %c0_i32_0 = arith.constant 0 : i32
    return %arg0, %c0_i32 : i32, i32
  }
  func.func @transform_4(%arg0: i32) -> (i32, i32) {
    %c0_i32 = arith.constant 0 : i32
    %c0_i32_0 = arith.constant 0 : i32
    return %arg0, %c0_i32 : i32, i32
  }
}

</mosaic_0001>

<bundles_post_ra>
// kernel: tpu_custom_call.1
= control target key start
LH: loop header
LB: loop body
LE: loop exit
PB: predicated region body
PF: predicated region fallthrough
CT: control target
= control target key end

     0   :  { %s278_s0 = inlined_call_operand.vmem [shape: f32[1,32], index: 0, kind: input, shape index: {}]   ;;  %s279_s1 = inlined_call_operand.<no memory space> [shape: f32[1,1], index: 1, kind: input, shape index: {}]   ;;  %s280_s2 = inlined_call_operand.hbm [shape: f32[16,32], index: 2, kind: input, shape index: {}]   ;;  %s281_s3 = inlined_call_operand.hbm [shape: f32[16,32], index: 3, kind: input, shape index: {}]   ;;  %s282_s4 = inlined_call_operand.hbm [shape: f32[16,32], index: 4, kind: output, shape index: {}]  }
   0x1   :  { %v9_v0 = vstv %s279_s1 }
   0x2   :  { %10 = vst [vmem:[#allocation2] sm:$0x1] %v9_v0 }
   0x3   :  { %11 = vsyncpa [#allocation4], 0 }
   0x4   :  { %12 = vsyncpa [#allocation7], 0 }
   0x5   :  { %13 = vsyncpa [#allocation5], 0  ;;  %s196_s17 = smov [#allocation3]   ;;  %s124_s21 = scalar_lea.hbm %s280_s2, 256 }
   0x6   :  { %s23_s18 = sshll.u32 %s196_s17, 4  ;;  %p125_p0 = scmp.ne.s32.totalorder %s280_s2, %s124_s21  ;;  %s24_s18 = int_to_ptr.vmem [resolvable:$true] %s23_s18 }
   0x7   :  { %p128_p1 = scmp.lt.u32.totalorder %s124_s21, %s280_s2 }
   0x9   :  { %p130_p2 = pnand %p128_p1, %p125_p0 }
   0xb   :  { %133 = shalt.err (!%p130_p2)
}
   0xc   :  { %s134_s1 = scalar_lea.vmem %s24_s18, 256  ;;  %p139_p4 = scmp.lt.s32.totalorder %s24_s18, %s24_s18 }
   0xd   :  { %p135_p3 = scmp.ne.s32.totalorder %s24_s18, %s134_s1  ;;  %p140_p5 = scmp.lt.s32.totalorder %s134_s1, %s134_s1 }
   0xf   :  { %p141_p6 = por %p140_p5, %p139_p4 }
  0x11   :  { %p142_p7 = pnand %p141_p6, %p135_p3 }
  0x13   :  { %145 = shalt.err (!%p142_p7)
}
  0x14   :  { %s197_s26 = smov 128   ;;  %s198_s27 = smov 8  }
  0x15   :  { %29 = dma.hbm_to_vmem [thread:$0]  %s280_s2, 256, %s24_s18, [#allocation4], %s197_s26, %s197_s26, %s198_s27  }
  0x16   :  { %s199_s30 = smov [#allocation6]   ;;  %s146_s8 = scalar_lea.hbm %s281_s3, 256 }
  0x17   :  { %s35_s5 = sshll.u32 %s199_s30, 4  ;;  %p147_p8 = scmp.ne.s32.totalorder %s281_s3, %s146_s8  ;;  %s36_s5 = int_to_ptr.vmem [resolvable:$true] %s35_s5 }
  0x18   :  { %p150_p9 = scmp.lt.u32.totalorder %s146_s8, %s281_s3 }
  0x1a   :  { %p152_p10 = pnand %p150_p9, %p147_p8 }
  0x1c   :  { %155 = shalt.err (!%p152_p10)
}
  0x1d   :  { %s156_s13 = scalar_lea.vmem %s36_s5, 256  ;;  %p161_p12 = scmp.lt.s32.totalorder %s36_s5, %s36_s5 }
  0x1e   :  { %p157_p11 = scmp.ne.s32.totalorder %s36_s5, %s156_s13  ;;  %p162_p13 = scmp.lt.s32.totalorder %s156_s13, %s156_s13 }
  0x20   :  { %p163_p0 = por %p162_p13, %p161_p12 }
  0x22   :  { %p164_p1 = pnand %p163_p0, %p157_p11 }
  0x24   :  { %167 = shalt.err (!%p164_p1)
}
  0x25   :  { %41 = dma.hbm_to_vmem [thread:$0]  %s281_s3, 256, %s36_s5, [#allocation7], %s197_s26, %s197_s26, %s198_s27  }
  0x26   :  { %190 = dma.done.wait [#allocation4], 256  }
  0x27   :  { %191 = vsyncadd [#allocation4], 4294967040 }
  0x28   :  { %192 = dma.done.wait [#allocation7], 256  }
  0x29   :  { %193 = vsyncadd [#allocation7], 4294967040  ;;  %v200_v1 = vmov 0   ;;  %v49_v2 = vld [vmem:[#allocation2] sm:$0x1]  ;;  %v55_v3 = vlaneseq  ;;  %v69_v18 = vld [vmem:[#allocation6] sm:$0xff] }
  0x2a   :  { %117 = vset.pattern.permute.xlu0 %v200_v1  ;;  %v48_v8 = vld [vmem:[%s278_s0] sm:$0x1]  ;;  %v67_v19 = vld [vmem:[#allocation3] sm:$0xff]  ;;  %v68_v20 = vld [vmem:[#allocation3 + $0x8] sm:$0xff]  ;;  %s201_s3 = smov [#allocation8]   ;;  %vm90_vm0 = vcmask 261120  }
  0x2b   :  { %52 = vperm.xlu0 %117, %v49_v2   ;;  %v56_v4 = vshrl.u32 %v55_v3, 7  ;;  %v70_v21 = vld [vmem:[#allocation6 + $0x8] sm:$0xff]  ;;  %s98_s17 = sshll.u32 %s201_s3, 4  ;;  %s99_s17 = int_to_ptr.vmem [resolvable:$true] %s98_s17 }
  0x2c   :  { %s168_s0 = scalar_lea.vmem %s99_s17, 256  ;;  %p173_p3 = scmp.lt.s32.totalorder %s99_s17, %s99_s17 }
  0x2d   :  { %v57_v5 = vsub.s32 0, %v56_v4  ;;  %p169_p2 = scmp.ne.s32.totalorder %s99_s17, %s168_s0  ;;  %p174_p4 = scmp.lt.s32.totalorder %s168_s0, %s168_s0 }
  0x2f   :  { %p175_p5 = por %p174_p4, %p173_p3 }
  0x31   :  { %p176_p6 = pnand %p175_p5, %p169_p2 }
  0xaa   :  { %v53_v6 = vpop.permute.xlu0 %52 }
  0xab   :  { %v58_v7 = vrot.slane %v53_v6, %v57_v5 }
  0xad   :  { %118 = vrcp.f32 %v58_v7 }
  0xb7   :  { %v119_v9 = vpop.eup %118 }
  0xb8   :  { %v60_v10 = vmul.f32 %v119_v9, %v48_v8 }
  0xba   :  { %v61_v11 = vsub.f32 0.0, %v60_v10 }
  0xbc   :  { %v62_v12 = vmul.f32 1.442695, %v61_v11 }
  0xbe   :  { %120 = vpow2.f32 %v62_v12 }
  0xc8   :  { %v121_v13 = vpop.eup %120 }
  0xc9   :  { %v64_v14 = vadd.f32 1.0, %v121_v13 }
  0xcb   :  { %122 = vrcp.f32 %v64_v14 }
  0xd5   :  { %v123_v15 = vpop.eup %122 }
  0xd6   :  { %v71_v16 = vsub.f32 1.0, %v123_v15  ;;  %v84_v17 = vrot.slane %v123_v15, %v57_v5 }
  0xd8   :  { %v76_v22 = vrot.slane %v71_v16, %v57_v5  ;;  %v86_v25 = vmul.f32 %v84_v17, %v69_v18  ;;  %v87_v26 = vmul.f32 %v84_v17, %v70_v21 }
  0xda   :  { %v78_v23 = vmul.f32 %v76_v22, %v67_v19  ;;  %v79_v24 = vmul.f32 %v76_v22, %v68_v20 }
  0xdc   :  { %v88_v27 = vadd.f32 %v86_v25, %v78_v23  ;;  %v89_v28 = vadd.f32 %v87_v26, %v79_v24 }
  0xde   :  { %91 = vst.msk [vmem:[#allocation8] sm:$0xff] %vm90_vm0, %v88_v27  ;;  %92 = vst.msk [vmem:[#allocation8 + $0x8] sm:$0xff] %vm90_vm0, %v89_v28 }
  0xdf   :  { %179 = shalt.err (!%p176_p6)
}
  0xe0   :  { %s180_s20 = scalar_lea.hbm %s282_s4, 256 }
  0xe1   :  { %p181_p7 = scmp.ne.s32.totalorder %s282_s4, %s180_s20  ;;  %p184_p8 = scmp.lt.u32.totalorder %s180_s20, %s282_s4 }
  0xe3   :  { %p186_p9 = pnand %p184_p8, %p181_p7 }
  0xe5   :  { %189 = shalt.err (!%p186_p9)
}
  0xe6   :  { %104 = dma.vmem_to_hbm [thread:$0]  %s99_s17, 256, %s282_s4, [#allocation5], %s197_s26, %s197_s26, %s198_s27  }
  0xe7   :  { %194 = dma.done.wait [#allocation5], 256  }
  0xe8   :  { %195 = vsyncadd [#allocation5], 4294967040 }
  0xe9   :  { %108 = vsyncpa [#allocation4], 1 }
  0xea   :  { %109 = vsyncpa [#allocation7], 1 }
  0xeb   :  { %110 = vsyncpa [#allocation5], 1 }

</bundles_post_ra>
